<compile_context>
chip_gen: v6e
topology: v6e:2x2x1
jax: 0.10.0
libtpu: 0.0.40
codegen_flags: <defaults>
</compile_context>

<pallas_src>
import functools

import jax
import jax.numpy as jnp
from jax.experimental import pallas as pl
from jax.experimental.pallas import tpu as pltpu

LN_EPS = 1e-5


def _round_up(a: int, b: int) -> int:
    return (a + b - 1) // b * b


@functools.lru_cache(maxsize=1)
def _vmem_capacity_bytes() -> int:
    try:
        return int(pltpu.get_tpu_info().vmem_capacity_bytes)
    except Exception:  # pragma: no cover - conservative fallback (v7x per-TC size)
        return 64 * 1024 * 1024


def _pick_tm(n_rows: int, tm: int) -> int:
    """Row tile: multiple of 8, <= tm, padded-row waste bounded (~8 rows)."""
    n8 = _round_up(max(n_rows, 1), 8)
    if n8 <= tm:
        return n8
    n_tiles = -(-n8 // tm)                       # split into near-equal <= tm tiles
    return _round_up(-(-n8 // n_tiles), 8)


def _pick_tk(d_ff: int, tk: int) -> int:
    """Largest divisor of d_ff that is a multiple of 128 (else 8) and <= tk."""
    for step in (128, 8):
        best, cand = 0, step
        while cand <= min(tk, d_ff):
            if d_ff % cand == 0:
                best = cand
            cand += step
        if best:
            return best
    return d_ff


# --------------------------------------------------------------------------- kernels
def ffn_resident_kernel(alpha_ref, x_ref, w1_ref, b1_ref, w2_ref, b2_ref,
                        g_ref, bt_ref, o_ref):
    """Weight-resident path: one (tm, d) row tile, full d_ff, no accumulator scratch."""
    x = x_ref[...]                                                # (tm, d), native dtype

    # Linear 1: (tm, d) @ (d, d_ff) on the MXU, f32 accumulate, no operand upcast.
    h = jnp.dot(x, w1_ref[...], preferred_element_type=jnp.float32)
    h = h + b1_ref[...].astype(jnp.float32)

    # PReLU with a single learnable slope (nn.PReLU(init=0.2) has one parameter).
    alpha = alpha_ref[0]
    h = jnp.where(h > 0, h, alpha * h)

    # Linear 2: (tm, d_ff) @ (d_ff, d).
    y = jnp.dot(h.astype(w2_ref.dtype), w2_ref[...],
                preferred_element_type=jnp.float32)

    # Dropout (eval) is identity; residual add, LayerNorm over the last axis.
    z = y + (b2_ref[...].astype(jnp.float32) + x.astype(jnp.float32))
    mean = jnp.mean(z, axis=-1, keepdims=True)
    cz = z - mean
    var = jnp.mean(cz * cz, axis=-1, keepdims=True)
    zhat = cz * jax.lax.rsqrt(var + LN_EPS)
    o_ref[...] = (zhat * g_ref[...].astype(jnp.float32)
                  + bt_ref[...].astype(jnp.float32)).astype(o_ref.dtype)


def ffn_ktiled_kernel(alpha_ref, x_ref, w1_ref, b1_ref, w2_ref, b2_ref,
                      g_ref, bt_ref, o_ref, acc_ref):
    """K-tiled path: one (tm, d) row tile x one tk-wide chunk of d_ff.

    Grid = (row tiles, d_ff chunks).  The d_ff axis accumulates into acc_ref (f32);
    the residual-add + LayerNorm epilogue runs on the last chunk.
    """
    k = pl.program_id(1)
    nk = pl.num_programs(1)

    @pl.when(k == 0)
    def _init():
        acc_ref[...] = jnp.zeros_like(acc_ref)

    x = x_ref[...]                                                # (tm, d), native dtype

    h = jnp.dot(x, w1_ref[...], preferred_element_type=jnp.float32)
    h = h + b1_ref[...].astype(jnp.float32)
    alpha = alpha_ref[0]
    h = jnp.where(h > 0, h, alpha * h)

    acc_ref[...] += jnp.dot(h.astype(w2_ref.dtype), w2_ref[...],
                            preferred_element_type=jnp.float32)

    @pl.when(k == nk - 1)
    def _finalize():
        # Reuse the x tile loaded above (same block for every k) — no x_ref re-read.
        z = acc_ref[...] + (b2_ref[...].astype(jnp.float32) + x.astype(jnp.float32))
        mean = jnp.mean(z, axis=-1, keepdims=True)
        cz = z - mean
        var = jnp.mean(cz * cz, axis=-1, keepdims=True)
        zhat = cz * jax.lax.rsqrt(var + LN_EPS)
        o_ref[...] = (zhat * g_ref[...].astype(jnp.float32)
                      + bt_ref[...].astype(jnp.float32)).astype(o_ref.dtype)


# --------------------------------------------------------------------------- wrapper
@functools.partial(jax.jit, static_argnames=("tm", "tk", "force_k_tiling"))
def _ffn_2d(x, alpha, w1, b1, w2, b2, gamma, beta, *, tm, tk, force_k_tiling):
    """x: (N, d_model).  Returns (N, d_model) in x.dtype."""
    if tm % 8 != 0:
        raise ValueError(f"tm must be a multiple of 8, got {tm}")
    if tk % 128 != 0:
        raise ValueError(f"tk must be a multiple of 128, got {tk}")

    N, d = x.shape
    d_ff = w1.shape[1]

    vmem_cap = _vmem_capacity_bytes()
    # Never declare the full physical VMEM: ~56 MiB on v7x (64), ~112 MiB on v5e/v6e (128).
    vmem_limit = max(32 << 20, min(vmem_cap * 7 // 8, vmem_cap - (8 << 20)))
    budget = vmem_limit - (6 << 20)          # headroom for compiler scratch / semaphores

    w_bytes = jnp.dtype(w1.dtype).itemsize
    x_bytes = jnp.dtype(x.dtype).itemsize

    # ---------------- tile selection (trace-time, static shapes) ----------------
    use_resident = False
    if not force_k_tiling:
        tm_res = _pick_tm(N, tm)
        resident_fp = (2 * 2 * d * d_ff * w_bytes          # W1 + W2 (x2 bufs, pessimistic)
                       + 2 * (d_ff + 3 * d) * 4            # biases / LN params
                       + 4 * tm_res * d * x_bytes          # x + out tiles (x2 bufs)
                       + tm_res * d_ff * 4                  # intermediate h (f32)
                       + 2 * tm_res * d * 4)                # z / LN temporaries
        use_resident = resident_fp <= budget

    if use_resident:
        tm_eff = tm_res
        tk_eff = d_ff
    else:
        # Weights get re-streamed once per row tile -> raise tm for arithmetic intensity.
        tm_eff = _pick_tm(N, max(tm, 512))
        tk_eff = _pick_tk(d_ff, tk)

        def ktiled_fp(tm_e, tk_e):
            return (2 * 2 * d * tk_e * w_bytes              # W1 + W2 chunks (x2 bufs)
                    + 2 * (tk_e + 3 * d) * 4
                    + 4 * tm_e * d * x_bytes                # x + out tiles (x2 bufs)
                    + tm_e * d * 4                          # f32 accumulator scratch
                    + tm_e * tk_e * 4                       # h chunk (f32)
                    + 2 * tm_e * d * 4)                     # LN temporaries

        # Shrink tk before tm (tm sets arithmetic intensity, tk does not).
        while ktiled_fp(tm_eff, tk_eff) > budget:
            new_tk = _pick_tk(d_ff, max(128, tk_eff // 2))
            if new_tk < tk_eff:
                tk_eff = new_tk
            elif tm_eff > 8:
                tm_eff = _round_up(max(8, tm_eff // 2), 8)
            else:
                break

    n_pad = _round_up(N, tm_eff)
    if n_pad != N:
        x = jnp.pad(x, ((0, n_pad - N), (0, 0)))            # ragged rows -> zero padding

    compiler_params = pltpu.CompilerParams(
        dimension_semantics=("parallel",) if use_resident else ("parallel", "arbitrary"),
        vmem_limit_bytes=vmem_limit,
    )

    if use_resident:
        out = pl.pallas_call(
            ffn_resident_kernel,
            out_shape=jax.ShapeDtypeStruct((n_pad, d), x.dtype),
            grid_spec=pltpu.PrefetchScalarGridSpec(
                num_scalar_prefetch=0,
                grid=(n_pad // tm_eff,),
                in_specs=[
                    pl.BlockSpec(memory_space=pltpu.MemorySpace.SMEM),  # alpha (1,)
                    pl.BlockSpec((tm_eff, d), lambda i: (i, 0)),        # x row tile
                    pl.BlockSpec((d, d_ff), lambda i: (0, 0)),          # W1 (resident)
                    pl.BlockSpec((1, d_ff), lambda i: (0, 0)),          # b1
                    pl.BlockSpec((d_ff, d), lambda i: (0, 0)),          # W2 (resident)
                    pl.BlockSpec((1, d), lambda i: (0, 0)),             # b2
                    pl.BlockSpec((1, d), lambda i: (0, 0)),             # LN gamma
                    pl.BlockSpec((1, d), lambda i: (0, 0)),             # LN beta
                ],
                out_specs=pl.BlockSpec((tm_eff, d), lambda i: (i, 0)),
            ),
            compiler_params=compiler_params,
        )(alpha, x, w1, b1, w2, b2, gamma, beta)
    else:
        out = pl.pallas_call(
            ffn_ktiled_kernel,
            out_shape=jax.ShapeDtypeStruct((n_pad, d), x.dtype),
            grid_spec=pltpu.PrefetchScalarGridSpec(
                num_scalar_prefetch=0,
                grid=(n_pad // tm_eff, d_ff // tk_eff),
                in_specs=[
                    pl.BlockSpec(memory_space=pltpu.MemorySpace.SMEM),  # alpha (1,)
                    pl.BlockSpec((tm_eff, d), lambda i, k: (i, 0)),     # x row tile
                    pl.BlockSpec((d, tk_eff), lambda i, k: (0, k)),     # W1 d_ff chunk
                    pl.BlockSpec((1, tk_eff), lambda i, k: (0, k)),     # b1 d_ff chunk
                    pl.BlockSpec((tk_eff, d), lambda i, k: (k, 0)),     # W2 d_ff chunk
                    pl.BlockSpec((1, d), lambda i, k: (0, 0)),          # b2
                    pl.BlockSpec((1, d), lambda i, k: (0, 0)),          # LN gamma
                    pl.BlockSpec((1, d), lambda i, k: (0, 0)),          # LN beta
                ],
                out_specs=pl.BlockSpec((tm_eff, d), lambda i, k: (i, 0)),
                scratch_shapes=[pltpu.VMEM((tm_eff, d), jnp.float32)],  # f32 accumulator
            ),
            compiler_params=compiler_params,
        )(alpha, x, w1, b1, w2, b2, gamma, beta)

    return out[:N] if n_pad != N else out


def feed_forward_network(x, alpha, w1, b1, w2, b2, gamma, beta, *,
                         tm=512, tk=512, force_k_tiling=False):
    """x: (..., d_model).  Fused FFN + residual + LayerNorm (eval-mode dropout)."""
    d = x.shape[-1]
    lead = x.shape[:-1]
    out2d = _ffn_2d(x.reshape(-1, d), alpha, w1, b1, w2, b2, gamma, beta,
                    tm=tm, tk=tk, force_k_tiling=force_k_tiling)
    return out2d.reshape(*lead, d)


# --------------------------------------------------------------------------- testing
def reference(x2d, alpha, w1, b1, w2, b2, gamma, beta):
    f32 = jnp.float32
    x2d, w1, b1, w2, b2 = (a.astype(f32) for a in (x2d, w1, b1, w2, b2))
    gamma, beta = gamma.astype(f32), beta.astype(f32)
    hi = jax.lax.Precision.HIGHEST
    h = jnp.dot(x2d, w1, precision=hi) + b1
    h = jnp.where(h > 0, h, alpha[0] * h)
    y = jnp.dot(h, w2, precision=hi) + b2
    z = y + x2d
    mean = jnp.mean(z, axis=-1, keepdims=True)
    var = jnp.mean((z - mean) ** 2, axis=-1, keepdims=True)
    return (z - mean) / jnp.sqrt(var + LN_EPS) * gamma + beta


def _init_params(key, d_model, dtype=jnp.float32):
    """Shapes match nn.Linear / nn.PReLU / nn.LayerNorm (weights pre-transposed)."""
    d_ff = d_model * 2
    k_w1, k_b1, k_w2, k_b2 = jax.random.split(key, 4)
    bound1 = d_model ** -0.5
    bound2 = d_ff ** -0.5
    w1 = jax.random.uniform(k_w1, (d_model, d_ff), jnp.float32, -bound1, bound1)
    b1 = jax.random.uniform(k_b1, (1, d_ff), jnp.float32, -bound1, bound1)
    w2 = jax.random.uniform(k_w2, (d_ff, d_model), jnp.float32, -bound2, bound2)
    b2 = jax.random.uniform(k_b2, (1, d_model), jnp.float32, -bound2, bound2)
    alpha = jnp.array([0.2], dtype=jnp.float32)            # PReLU(init=0.2), 1 param
    gamma = jnp.ones((1, d_model), jnp.float32)
    beta = jnp.zeros((1, d_model), jnp.float32)
    # alpha stays f32 (SMEM scalar); everything else may be lower precision.
    cast = lambda a: a.astype(dtype)
    return (alpha, cast(w1), cast(b1), cast(w2), cast(b2), cast(gamma), cast(beta))


if __name__ == "__main__":
    key = jax.random.PRNGKey(0)
    k_p32, k_p128, k_x1, k_x2, k_x3, k_x4 = jax.random.split(key, 6)

    # ---- Case 1: f32, (batch=2, seq=8, d_model=32) — weight-resident path ----
    params32 = _init_params(k_p32, 32, jnp.float32)
    x1 = jax.random.normal(k_x1, (2, 8, 32), jnp.float32)
    out1 = jax.block_until_ready(feed_forward_network(x1, *params32))
    ref1 = reference(x1.reshape(-1, 32), *params32)
    assert out1.shape == (2, 8, 32)
    assert jnp.allclose(out1.reshape(-1, 32), ref1, atol=1e-3, rtol=1e-3), \
        "mismatch vs reference (case 1)"

    # ---- Case 2: ragged row count (15 rows) — exercises the padding path ----
    x2 = jax.random.normal(k_x2, (15, 32), jnp.float32)
    out2 = jax.block_until_ready(feed_forward_network(x2, *params32))
    ref2 = reference(x2, *params32)
    assert out2.shape == (15, 32)
    assert jnp.allclose(out2, ref2, atol=1e-3, rtol=1e-3), \
        "mismatch vs reference (case 2, ragged rows)"

    # ---- Case 3: forced K-tiled path, d_model=128 (d_ff=256), tk=128 -> 2 chunks ----
    params128 = _init_params(k_p128, 128, jnp.float32)
    x3 = jax.random.normal(k_x3, (16, 128), jnp.float32)
    out3 = jax.block_until_ready(
        feed_forward_network(x3, *params128, tk=128, force_k_tiling=True))
    ref3 = reference(x3, *params128)
    assert out3.shape == (16, 128)
    assert jnp.allclose(out3, ref3, atol=1e-3, rtol=1e-3), \
        "mismatch vs reference (case 3, K-tiled accumulation)"

    # ---- Case 4: bf16 weights + activations (halved DMA bytes, bf16 MXU path) ----
    params_bf16 = _init_params(k_p128, 128, jnp.bfloat16)
    x4 = jax.random.normal(k_x4, (2, 16, 128), jnp.bfloat16)
    out4 = jax.block_until_ready(feed_forward_network(x4, *params_bf16))
    ref4 = reference(x4.reshape(-1, 128), *params_bf16)
    assert out4.shape == (2, 16, 128)
    assert jnp.allclose(out4.reshape(-1, 128).astype(jnp.float32), ref4,
                        atol=1e-1, rtol=1e-1), \
        "mismatch vs reference (case 4, bf16)"

    print("KERNEL_OK")
</pallas_src>

<mosaic_0001>
module attributes {stable_mosaic.version = 11 : i64} {
  func.func @ffn_resident_kernel(%arg0: i32, %arg1: memref<1xf32, #tpu.memory_space<smem>>, %arg2: memref<16x32xf32, #tpu.memory_space<vmem>>, %arg3: memref<32x64xf32, #tpu.memory_space<vmem>>, %arg4: memref<1x64xf32, #tpu.memory_space<vmem>>, %arg5: memref<64x32xf32, #tpu.memory_space<vmem>>, %arg6: memref<1x32xf32, #tpu.memory_space<vmem>>, %arg7: memref<1x32xf32, #tpu.memory_space<vmem>>, %arg8: memref<1x32xf32, #tpu.memory_space<vmem>>, %arg9: memref<16x32xf32, #tpu.memory_space<vmem>>) attributes {dimension_semantics = [#tpu.dimension_semantics<parallel>], iteration_bounds = array<i64: 1>, scalar_prefetch = 0 : i64, scratch_operands = 0 : i64, tpu.core_type = #tpu.core_type<tc>, window_params = [{transform_indices = @transform_0, window_bounds = array<i64: 1>}, {transform_indices = @transform_1, window_bounds = array<i64: 16, 32>}, {pipeline_mode = #tpu.pipeline_mode<synchronous>, transform_indices = @transform_2, window_bounds = array<i64: 32, 64>}, {pipeline_mode = #tpu.pipeline_mode<synchronous>, transform_indices = @transform_3, window_bounds = array<i64: 1, 64>}, {pipeline_mode = #tpu.pipeline_mode<synchronous>, transform_indices = @transform_4, window_bounds = array<i64: 64, 32>}, {pipeline_mode = #tpu.pipeline_mode<synchronous>, transform_indices = @transform_5, window_bounds = array<i64: 1, 32>}, {pipeline_mode = #tpu.pipeline_mode<synchronous>, transform_indices = @transform_6, window_bounds = array<i64: 1, 32>}, {pipeline_mode = #tpu.pipeline_mode<synchronous>, transform_indices = @transform_7, window_bounds = array<i64: 1, 32>}, {transform_indices = @transform_8, window_bounds = array<i64: 16, 32>}]} {
    %c0 = arith.constant 0 : index
    %c0_0 = arith.constant 0 : index
    %0 = vector.load %arg2[%c0, %c0_0] : memref<16x32xf32, #tpu.memory_space<vmem>>, vector<16x32xf32>
    %c0_1 = arith.constant 0 : index
    %c0_2 = arith.constant 0 : index
    %1 = vector.load %arg3[%c0_1, %c0_2] : memref<32x64xf32, #tpu.memory_space<vmem>>, vector<32x64xf32>
    %cst = arith.constant dense<0.000000e+00> : vector<16x64xf32>
    %2 = tpu.matmul %0, %1, %cst {dimension_numbers = #tpu.dot_dimension_numbers<[1], [0], [0], [1], [0, 0, 1, 1], [], []>} : vector<16x32xf32>, vector<32x64xf32>, vector<16x64xf32> -> vector<16x64xf32>
    %c0_3 = arith.constant 0 : index
    %c0_4 = arith.constant 0 : index
    %3 = vector.load %arg4[%c0_3, %c0_4] : memref<1x64xf32, #tpu.memory_space<vmem>>, vector<1x64xf32>
    %4 = vector.broadcast %3 : vector<1x64xf32> to vector<16x64xf32>
    %5 = arith.addf %2, %4 : vector<16x64xf32>
    %c0_5 = arith.constant 0 : index
    %6 = memref.load %arg1[%c0_5] : memref<1xf32, #tpu.memory_space<smem>>
    %cst_6 = arith.constant 0.000000e+00 : f32
    %7 = vector.broadcast %cst_6 : f32 to vector<16x64xf32>
    %8 = arith.cmpf ogt, %5, %7 : vector<16x64xf32>
    %9 = vector.broadcast %6 : f32 to vector<16x64xf32>
    %10 = arith.mulf %9, %5 : vector<16x64xf32>
    %11 = arith.select %8, %5, %10 : vector<16x64xi1>, vector<16x64xf32>
    %c0_7 = arith.constant 0 : index
    %c0_8 = arith.constant 0 : index
    %12 = vector.load %arg5[%c0_7, %c0_8] : memref<64x32xf32, #tpu.memory_space<vmem>>, vector<64x32xf32>
    %cst_9 = arith.constant dense<0.000000e+00> : vector<16x32xf32>
    %13 = tpu.matmul %11, %12, %cst_9 {dimension_numbers = #tpu.dot_dimension_numbers<[1], [0], [0], [1], [0, 0, 1, 1], [], []>} : vector<16x64xf32>, vector<64x32xf32>, vector<16x32xf32> -> vector<16x32xf32>
    %c0_10 = arith.constant 0 : index
    %c0_11 = arith.constant 0 : index
    %14 = vector.load %arg6[%c0_10, %c0_11] : memref<1x32xf32, #tpu.memory_space<vmem>>, vector<1x32xf32>
    %15 = vector.broadcast %14 : vector<1x32xf32> to vector<16x32xf32>
    %16 = arith.addf %15, %0 : vector<16x32xf32>
    %17 = arith.addf %13, %16 : vector<16x32xf32>
    %cst_12 = arith.constant dense<0.000000e+00> : vector<16xf32>
    %18 = vector.multi_reduction <add>, %17, %cst_12 [1] : vector<16x32xf32> to vector<16xf32>
    %19 = vector.shape_cast %18 : vector<16xf32> to vector<16x1xf32>
    %cst_13 = arith.constant 3.200000e+01 : f32
    %20 = vector.broadcast %cst_13 : f32 to vector<16x1xf32>
    %21 = arith.divf %19, %20 : vector<16x1xf32>
    %22 = vector.broadcast %21 : vector<16x1xf32> to vector<16x32xf32>
    %23 = arith.subf %17, %22 : vector<16x32xf32>
    %24 = arith.mulf %23, %23 : vector<16x32xf32>
    %cst_14 = arith.constant dense<0.000000e+00> : vector<16xf32>
    %25 = vector.multi_reduction <add>, %24, %cst_14 [1] : vector<16x32xf32> to vector<16xf32>
    %26 = vector.shape_cast %25 : vector<16xf32> to vector<16x1xf32>
    %cst_15 = arith.constant 3.200000e+01 : f32
    %27 = vector.broadcast %cst_15 : f32 to vector<16x1xf32>
    %28 = arith.divf %26, %27 : vector<16x1xf32>
    %cst_16 = arith.constant 9.99999974E-6 : f32
    %29 = vector.broadcast %cst_16 : f32 to vector<16x1xf32>
    %30 = arith.addf %28, %29 : vector<16x1xf32>
    %31 = math.rsqrt %30 : vector<16x1xf32>
    %32 = vector.broadcast %31 : vector<16x1xf32> to vector<16x32xf32>
    %33 = arith.mulf %23, %32 : vector<16x32xf32>
    %c0_17 = arith.constant 0 : index
    %c0_18 = arith.constant 0 : index
    %34 = vector.load %arg7[%c0_17, %c0_18] : memref<1x32xf32, #tpu.memory_space<vmem>>, vector<1x32xf32>
    %35 = vector.broadcast %34 : vector<1x32xf32> to vector<16x32xf32>
    %36 = arith.mulf %33, %35 : vector<16x32xf32>
    %c0_19 = arith.constant 0 : index
    %c0_20 = arith.constant 0 : index
    %37 = vector.load %arg8[%c0_19, %c0_20] : memref<1x32xf32, #tpu.memory_space<vmem>>, vector<1x32xf32>
    %38 = vector.broadcast %37 : vector<1x32xf32> to vector<16x32xf32>
    %39 = arith.addf %36, %38 : vector<16x32xf32>
    %c0_21 = arith.constant 0 : index
    %c0_22 = arith.constant 0 : index
    %40 = vector.load %arg9[%c0_21, %c0_22] : memref<16x32xf32, #tpu.memory_space<vmem>>, vector<16x32xf32>
    tpu.vector_store %arg9[%c0_21, %c0_22], %39 {strides = array<i32>} : memref<16x32xf32, #tpu.memory_space<vmem>>, vector<16x32xf32>,
    return
  }
  func.func @transform_0(%arg0: i32) -> i32 {
    %c0_i32 = arith.constant 0 : i32
    %c0_i32_0 = arith.constant 0 : i32
    return %c0_i32 : i32
  }
  func.func @transform_1(%arg0: i32) -> (i32, i32) {
    %c0_i32 = arith.constant 0 : i32
    %c0_i32_0 = arith.constant 0 : i32
    return %arg0, %c0_i32 : i32, i32
  }
  func.func @transform_2(%arg0: i32) -> (i32, i32) {
    %c0_i32 = arith.constant 0 : i32
    %c0_i32_0 = arith.constant 0 : i32
    %c0_i32_1 = arith.constant 0 : i32
    return %c0_i32, %c0_i32_0 : i32, i32
  }
  func.func @transform_3(%arg0: i32) -> (i32, i32) {
    %c0_i32 = arith.constant 0 : i32
    %c0_i32_0 = arith.constant 0 : i32
    %c0_i32_1 = arith.constant 0 : i32
    return %c0_i32, %c0_i32_0 : i32, i32
  }
  func.func @transform_4(%arg0: i32) -> (i32, i32) {
    %c0_i32 = arith.constant 0 : i32
    %c0_i32_0 = arith.constant 0 : i32
    %c0_i32_1 = arith.constant 0 : i32
    return %c0_i32, %c0_i32_0 : i32, i32
  }
  func.func @transform_5(%arg0: i32) -> (i32, i32) {
    %c0_i32 = arith.constant 0 : i32
    %c0_i32_0 = arith.constant 0 : i32
    %c0_i32_1 = arith.constant 0 : i32
    return %c0_i32, %c0_i32_0 : i32, i32
  }
  func.func @transform_6(%arg0: i32) -> (i32, i32) {
    %c0_i32 = arith.constant 0 : i32
    %c0_i32_0 = arith.constant 0 : i32
    %c0_i32_1 = arith.constant 0 : i32
    return %c0_i32, %c0_i32_0 : i32, i32
  }
  func.func @transform_7(%arg0: i32) -> (i32, i32) {
    %c0_i32 = arith.constant 0 : i32
    %c0_i32_0 = arith.constant 0 : i32
    %c0_i32_1 = arith.constant 0 : i32
    return %c0_i32, %c0_i32_0 : i32, i32
  }
  func.func @transform_8(%arg0: i32) -> (i32, i32) {
    %c0_i32 = arith.constant 0 : i32
    %c0_i32_0 = arith.constant 0 : i32
    return %arg0, %c0_i32 : i32, i32
  }
}

</mosaic_0001>

<bundles_post_ra>
// kernel: _ffn_2d.1
= control target key start
LH: loop header
LB: loop body
LE: loop exit
PB: predicated region body
PF: predicated region fallthrough
CT: control target
= control target key end

     0   :  { %vm44_vm0 = vcmask 261120   ;;  %s495_s0 = inlined_call_operand.<no memory space> [shape: f32[1], index: 0, kind: input, shape index: {}]   ;;  %s496_s1 = inlined_call_operand.vmem [shape: f32[16,32], index: 1, kind: input, shape index: {}]   ;;  %s497_s2 = inlined_call_operand.vmem [shape: f32[32,64], index: 2, kind: input, shape index: {}]   ;;  %s498_s3 = inlined_call_operand.vmem [shape: f32[1,64], index: 3, kind: input, shape index: {}]   ;;  %s499_s4 = inlined_call_operand.vmem [shape: f32[64,32], index: 4, kind: input, shape index: {}]   ;;  %s500_s5 = inlined_call_operand.vmem [shape: f32[1,32], index: 5, kind: input, shape index: {}]   ;;  %s501_s6 = inlined_call_operand.vmem [shape: f32[1,32], index: 6, kind: input, shape index: {}]   ;;  %s502_s7 = inlined_call_operand.vmem [shape: f32[1,32], index: 7, kind: input, shape index: {}]   ;;  %s503_s8 = inlined_call_operand.hbm [shape: f32[16,32], index: 8, kind: output, shape index: {}]  }
   0x1   :  { %v36_v0 = vld [vmem:[%s497_s2 + $0x18] sm:$0xff]  ;;  %v35_v1 = vld [vmem:[%s497_s2 + $0x10] sm:$0xff]  ;;  %v31_v2 = vld [vmem:[%s496_s1] sm:$0xff] }
   0x2   :  { %320 = vmatprep.subr.mxu0 %v36_v0  ;;  %v34_v3 = vld [vmem:[%s497_s2 + $0x8] sm:$0xff]  ;;  %328 = vmatprep.mubr.msk.f32.mxu0 %vm44_vm0, %v31_v2  ;;  %v141_v4 = vld [vmem:[%s499_s4 + $0x38] sm:$0xff]  ;;  %v140_v5 = vld [vmem:[%s499_s4 + $0x30] sm:$0xff] }
   0x3   :  { %321 = vmatpush3.msra.mxu0 %v36_v0  ;;  %331 = vmatprep.subr.mxu1 %v141_v4 }
   0x4   :  { %322 = vmatprep.subr.mxu0 %v35_v1 }
   0x5   :  { %14 = vsyncpa [#allocation4], 0  ;;  %323 = vmatpush3.msra.mxu0 %v35_v1  ;;  %v33_v6 = vld [vmem:[%s497_s2] sm:$0xff]  ;;  %332 = vmatpush3.msra.mxu1 %v141_v4  ;;  %v139_v7 = vld [vmem:[%s499_s4 + $0x28] sm:$0xff]  ;;  %v129_v17 = vstv %s495_s0  ;;  %vm151_vm3 = vcmask 523264   ;;  %s379_s15 = smov [#allocation3]  }
   0x6   :  { %324 = vmatprep.subr.mxu0 %v34_v3  ;;  %333 = vmatprep.subr.mxu1 %v140_v5  ;;  %v32_v8 = vld [vmem:[%s496_s1 + $0x8] sm:$0xff]  ;;  %v138_v9 = vld [vmem:[%s499_s4 + $0x20] sm:$0xff]  ;;  %v137_v10 = vld [vmem:[%s499_s4 + $0x18] sm:$0xff]  ;;  %s285_s16 = sshll.u32 %s379_s15, 4  ;;  %s286_s16 = int_to_ptr.vmem [resolvable:$true] %s285_s16 }
   0x7   :  { %325 = vmatpush3.msra.mxu0 %v34_v3  ;;  %334 = vmatpush3.msra.mxu1 %v140_v5  ;;  %v136_v11 = vld [vmem:[%s499_s4 + $0x10] sm:$0xff]  ;;  %v135_v12 = vld [vmem:[%s499_s4 + $0x8] sm:$0xff]  ;;  %v134_v13 = vld [vmem:[%s499_s4] sm:$0xff]  ;;  %s357_s17 = scalar_lea.vmem %s286_s16, 256  ;;  %p362_p1 = scmp.lt.s32.totalorder %s286_s16, %s286_s16 }
   0x8   :  { %326 = vmatprep.subr.mxu0 %v33_v6  ;;  %335 = vmatprep.subr.mxu1 %v139_v7  ;;  %v296_v14 = vld [vmem:[%s498_s3] ss:$0 sm:$0xff]  ;;  %p358_p0 = scmp.ne.s32.totalorder %s286_s16, %s357_s17  ;;  %p363_p2 = scmp.lt.s32.totalorder %s357_s17, %s357_s17 }
   0x9   :  { %327 = vmatpush3.msra.mxu0 %v33_v6  ;;  %336 = vmatpush3.msra.mxu1 %v139_v7  ;;  %v299_v24 = vld [vmem:[%s500_s5] ss:$0 sm:$0xff] }
   0xa   :  { %329 = vmatmul.mubr.msk.f32.vlgmr.msra.gmra.mxu0 %vm44_vm0, %v32_v8  ;;  %337 = vmatprep.subr.mxu1 %v138_v9  ;;  %v149_v25 = vadd.f32 %v299_v24, %v31_v2  ;;  %v150_v27 = vadd.f32 %v299_v24, %v32_v8  ;;  %v302_v50 = vld [vmem:[%s501_s6] ss:$0 sm:$0xff]  ;;  %p364_p3 = por %p363_p2, %p362_p1 }
   0xb   :  { %338 = vmatpush3.msra.mxu1 %v138_v9  ;;  %v303_v52 = vld [vmem:[%s502_s7] ss:$0 sm:$0xff] }
   0xc   :  { %339 = vmatprep.subr.mxu1 %v137_v10  ;;  %p365_p4 = pnand %p364_p3, %p358_p0 }
   0xd   :  { %340 = vmatpush3.msra.mxu1 %v137_v10 }
   0xe   :  { %341 = vmatprep.subr.mxu1 %v136_v11 }
   0xf   :  { %342 = vmatpush3.msra.mxu1 %v136_v11 }
  0x10   :  { %343 = vmatprep.subr.mxu1 %v135_v12 }
  0x11   :  { %344 = vmatpush3.msra.mxu1 %v135_v12 }
  0x12   :  { %345 = vmatprep.subr.mxu1 %v134_v13 }
  0x13   :  { %346 = vmatpush3.msra.mxu1 %v134_v13 }
  0xca   :  { %v330_v15 = vpop.f32.mrf.mxu0 }
  0xcb   :  { %v123_v16 = vadd.f32 %v330_v15, %v296_v14 }
  0xcc   :  { %v117_v18 = vpop.f32.mrf.mxu0 }
  0xcd   :  { %v118_v19 = vadd.f32 %v296_v14, %v117_v18  ;;  %v131_v20 = vmul.f32 %v129_v17, %v123_v16  ;;  %vm128_vm1 = vcmp.gt.f32.partialorder %v123_v16, 0.0 }
  0xcf   :  { %vm127_vm2 = vcmp.gt.f32.partialorder %v118_v19, 0.0  ;;  %v130_v21 = vmul.f32 %v129_v17, %v118_v19  ;;  %v133_v23 = vsel %vm128_vm1, %v123_v16, %v131_v20 }
  0xd1   :  { %v132_v22 = vsel %vm127_vm2, %v118_v19, %v130_v21 }
  0xd2   :  { %347 = vmatprep.mubr.msk.f32.mxu1 %vm151_vm3, %v132_v22 }
  0xd3   :  { %348 = vmatmul.mubr.msk.f32.vlgmr.msra.gmra.mxu1 %vm151_vm3, %v133_v23 }
 0x193   :  { %v349_v26 = vpop.f32.mrf.mxu1 }
 0x194   :  { %v230_v30 = vadd.f32 %v349_v26, %v150_v27 }
 0x195   :  { %v224_v28 = vpop.f32.mrf.mxu1 }
 0x196   :  { %v225_v29 = vadd.f32 %v224_v28, %v149_v25  ;;  %v236_v32 = vsel %vm44_vm0, %v230_v30, 0.0 }
 0x198   :  { %v233_v31 = vsel %vm44_vm0, %v225_v29, 0.0 }
 0x199   :  { %234 = vadd.xlane.f32.xlu0 %v233_v31 }
 0x19d   :  { %237 = vadd.xlane.f32.xlu0 %v236_v32 }
 0x222   :  { %v235_v33 = vpop.xlane.xlu0 %234 }
 0x223   :  { %v240_v34 = vmul.f32 0.03125, %v235_v33 }
 0x225   :  { %v242_v35 = vsub.f32 %v225_v29, %v240_v34 }
 0x226   :  { %v238_v36 = vpop.xlane.xlu0 %237 }
 0x227   :  { %v241_v37 = vmul.f32 0.03125, %v238_v36  ;;  %v244_v38 = vmul.f32 %v242_v35, %v242_v35 }
 0x229   :  { %v243_v39 = vsub.f32 %v230_v30, %v241_v37  ;;  %v246_v40 = vsel %vm44_vm0, %v244_v38, 0.0 }
 0x22a   :  { %247 = vadd.xlane.f32.xlu1 %v246_v40 }
 0x22b   :  { %v245_v41 = vmul.f32 %v243_v39, %v243_v39 }
 0x22d   :  { %v249_v42 = vsel %vm44_vm0, %v245_v41, 0.0 }
 0x22e   :  { %250 = vadd.xlane.f32.xlu1 %v249_v42 }
 0x2b3   :  { %v248_v43 = vpop.xlane.xlu1 %247 }
 0x2b4   :  { %v252_v44 = vmul.f32 0.03125, %v248_v43 }
 0x2b6   :  { %v254_v45 = vadd.f32 1e-05, %v252_v44 }
 0x2b7   :  { %v251_v46 = vpop.xlane.xlu1 %250 }
 0x2b8   :  { %353 = vrsqrt.f32 %v254_v45  ;;  %v253_v47 = vmul.f32 0.03125, %v251_v46 }
 0x2ba   :  { %v255_v48 = vadd.f32 1e-05, %v253_v47 }
 0x2bc   :  { %355 = vrsqrt.f32 %v255_v48 }
 0x2c5   :  { %v354_v49 = vpop.eup %353 }
 0x2c6   :  { %v258_v51 = vmul.f32 %v354_v49, %v242_v35 }
 0x2c8   :  { %v267_v53 = vmul.f32 %v302_v50, %v258_v51 }
 0x2c9   :  { %v356_v54 = vpop.eup %355 }
 0x2ca   :  { %v259_v55 = vmul.f32 %v356_v54, %v243_v39  ;;  %v276_v56 = vadd.f32 %v303_v52, %v267_v53 }
 0x2cc   :  { %v268_v57 = vmul.f32 %v302_v50, %v259_v55  ;;  %278 = vst.msk [vmem:[#allocation3] sm:$0xff] %vm44_vm0, %v276_v56 }
 0x2ce   :  { %v277_v58 = vadd.f32 %v303_v52, %v268_v57 }
 0x2d0   :  { %279 = vst.msk [vmem:[#allocation3 + $0x8] sm:$0xff] %vm44_vm0, %v277_v58 }
 0x2d1   :  { %368 = shalt.err (!%p365_p4)
}
 0x2d2   :  { %s380_s6 = smov 128   ;;  %s381_s7 = smov 8  }
 0x2d3   :  { %291 = dma.vmem_to_hbm [thread:$0]  %s286_s16, 256, %s503_s8, [#allocation4], %s380_s6, %s380_s6, %s381_s7  }
 0x2d4   :  { %377 = dma.done.wait [#allocation4], 256  }
 0x2d5   :  { %378 = vsyncadd [#allocation4], 4294967040 }
 0x2d6   :  { %295 = vsyncpa [#allocation4], 1 }

</bundles_post_ra>
